<compile_context>
chip_gen: v5e
topology: v5e:2x2
jax: 0.10.0
libtpu: 0.0.40
codegen_flags: <defaults>
</compile_context>

<pallas_src>
import jax
import jax.numpy as jnp
from jax.experimental import pallas as pl
from jax.experimental.pallas import tpu as pltpu


def _round_up(n, m):
    return ((n + m - 1) // m) * m


def _cdiv(n, m):
    return (n + m - 1) // m


def _pad2(a, rows, cols, dtype):
    a = a.astype(dtype)
    return jnp.pad(a, ((0, rows - a.shape[0]), (0, cols - a.shape[1])))


def _mlp_kernel(x_ref, w1_ref, b1_ref, w2_ref, b2_ref, w3_ref, b3_ref, o_ref, xp_ref):
    # x_ref:  (TM, in_dim) f32 activation tile (streamed over the batch grid)
    # w*_ref: bf16 weights (in, out), padded to lane multiples, VMEM-resident
    # b*_ref: f32 biases (1, out)
    # xp_ref: (TM, in_p) bf16 staging tile (fused flatten/cast/zero-pad)
    in_dim = x_ref.shape[1]

    # Fused cast + lane pad: pure VMEM traffic that hides under the HBM input
    # DMA (the kernel is memory bound on the activation stream).
    xp_ref[...] = jnp.zeros_like(xp_ref)
    xp_ref[:, :in_dim] = x_ref[...].astype(jnp.bfloat16)

    h1 = jnp.dot(xp_ref[...], w1_ref[...],
                 preferred_element_type=jnp.float32) + b1_ref[...]
    h1 = jnp.maximum(h1, 0.0)                 # f32 elementwise (v5e has no bf16 VPU)
    h2 = jnp.dot(h1.astype(jnp.bfloat16), w2_ref[...],
                 preferred_element_type=jnp.float32) + b2_ref[...]
    h2 = jnp.maximum(h2, 0.0)
    out = jnp.dot(h2.astype(jnp.bfloat16), w3_ref[...],
                  preferred_element_type=jnp.float32) + b3_ref[...]
    o_ref[...] = out.astype(o_ref.dtype)      # lane-dense (TM, 128) store


def mlp_mnist_pallas(x, params, *, tm=1024):
    """x: (B, C, H, W) float32 -> (B, num_classes) float32.

    tm is the batch tile.  Default 1024 fits comfortably on v5e/v6e/v7x; on
    v6e (128 MiB VMEM, single TC) tm up to ~2048 is still within the 32 MiB
    scoped clamp below.
    """
    w1, b1, w2, b2, w3, b3 = params
    B, C, H, W = x.shape
    in_dim = C * 28 * 28
    hid = w1.shape[1]
    num_classes = w3.shape[1]

    # --- preprocessing glue (plain JAX) -------------------------------------
    if (H, W) != (28, 28):
        # TODO(synk): torchvision Resize applies antialias when *downscaling*;
        # not replicated here (the upsampling path is equivalent).
        x = jax.image.resize(x, (B, C, 28, 28), method="bilinear")
    x_flat = x.reshape(B, in_dim)            # free view; stays f32 in HBM

    # --- MXU-friendly padded dims (weights only; x is padded inside kernel) --
    in_p = _round_up(in_dim, 128)            # 784 -> 896
    hid_p = _round_up(hid, 128)              # 200 -> 256
    out_p = _round_up(num_classes, 128)      # 10  -> 128

    # --- batch tiling --------------------------------------------------------
    TM = min(tm, _round_up(B, 16))           # 16: bf16 sublane packing
    if B >= 32 and _cdiv(B, TM) < 2:
        TM = _round_up(_cdiv(B, 2), 16)      # keep >=2 grid steps (v7x megacore)
    Bp = _round_up(B, TM)
    grid = (Bp // TM,)

    if Bp != B:                               # zero rows: inert, sliced off below
        x_flat = jnp.pad(x_flat, ((0, Bp - B), (0, 0)))

    w1p = _pad2(w1, in_p, hid_p, jnp.bfloat16)
    b1p = _pad2(b1, 1, hid_p, jnp.float32)
    w2p = _pad2(w2, hid_p, hid_p, jnp.bfloat16)
    b2p = _pad2(b2, 1, hid_p, jnp.float32)
    w3p = _pad2(w3, hid_p, out_p, jnp.bfloat16)
    b3p = _pad2(b3, 1, out_p, jnp.float32)

    weight_elems = in_p * hid_p + hid_p * hid_p + hid_p * out_p
    flops = 2 * Bp * weight_elems
    bytes_accessed = (
        Bp * in_dim * 4                        # x (f32, read exactly once)
        + weight_elems * 2                     # weights (bf16)
        + (2 * hid_p + out_p) * 4              # biases (f32)
        + Bp * out_p * 4                       # output (f32)
    )

    # VMEM: double-buffered x/out tiles + bf16 staging tile + weights/biases.
    vmem_bytes = (
        2 * TM * in_p * 4                      # x tile (f32), double-buffered
        + 2 * TM * out_p * 4                   # out tile (f32), double-buffered
        + TM * in_p * 2                        # bf16 staging scratch
        + 2 * (weight_elems * 2 + (2 * hid_p + out_p) * 4)
    )
    vmem_limit = min(max(16 << 20, int(vmem_bytes * 1.25)), 32 << 20)

    const_map = lambda i: (0, 0)   # weights/biases stay VMEM-resident across grid
    tile_map = lambda i: (i, 0)

    out = pl.pallas_call(
        _mlp_kernel,
        out_shape=jax.ShapeDtypeStruct((Bp, out_p), jnp.float32),
        grid=grid,
        in_specs=[
            pl.BlockSpec((TM, in_dim), tile_map),
            pl.BlockSpec((in_p, hid_p), const_map),
            pl.BlockSpec((1, hid_p), const_map),
            pl.BlockSpec((hid_p, hid_p), const_map),
            pl.BlockSpec((1, hid_p), const_map),
            pl.BlockSpec((hid_p, out_p), const_map),
            pl.BlockSpec((1, out_p), const_map),
        ],
        out_specs=pl.BlockSpec((TM, out_p), tile_map),
        scratch_shapes=[pltpu.VMEM((TM, in_p), jnp.bfloat16)],
        compiler_params=pltpu.CompilerParams(
            dimension_semantics=("parallel",),   # shard batch tiles across TCs
            vmem_limit_bytes=vmem_limit,
        ),
        cost_estimate=pl.CostEstimate(
            flops=flops, transcendentals=0, bytes_accessed=bytes_accessed
        ),
    )(x_flat, w1p, b1p, w2p, b2p, w3p, b3p)

    return out[:B, :num_classes]


def init_params(key, num_channels, num_classes, hidden=200):
    in_dim = num_channels * 28 * 28
    k1, k2, k3 = jax.random.split(key, 3)

    def linear(k, fan_in, fan_out):
        # Mirrors nn.Linear's U(-1/sqrt(fan_in), 1/sqrt(fan_in)) init.
        bound = 1.0 / jnp.sqrt(jnp.float32(fan_in))
        kw, kb = jax.random.split(k)
        w = jax.random.uniform(kw, (fan_in, fan_out), jnp.float32, -bound, bound)
        b = jax.random.uniform(kb, (1, fan_out), jnp.float32, -bound, bound)
        return w, b

    w1, b1 = linear(k1, in_dim, hidden)
    w2, b2 = linear(k2, hidden, hidden)
    w3, b3 = linear(k3, hidden, num_classes)
    return (w1, b1, w2, b2, w3, b3)


def reference(x, params):
    """Pure-JAX reference with matching numerics (bf16 MXU inputs, f32 accum)."""
    w1, b1, w2, b2, w3, b3 = params
    B, C, H, W = x.shape
    if (H, W) != (28, 28):
        x = jax.image.resize(x, (B, C, 28, 28), method="bilinear")
    h = x.reshape(B, C * 28 * 28).astype(jnp.bfloat16)
    h = jnp.maximum(
        jnp.dot(h, w1.astype(jnp.bfloat16), preferred_element_type=jnp.float32) + b1, 0.0)
    h = jnp.maximum(
        jnp.dot(h.astype(jnp.bfloat16), w2.astype(jnp.bfloat16),
                preferred_element_type=jnp.float32) + b2, 0.0)
    return jnp.dot(h.astype(jnp.bfloat16), w3.astype(jnp.bfloat16),
                   preferred_element_type=jnp.float32) + b3


if __name__ == "__main__":
    key = jax.random.PRNGKey(0)
    kx, kp = jax.random.split(key)

    num_classes = 10
    num_channels = 1   # MNIST
    batch = 2

    # Small spatial input; the module resizes to 28x28 internally.
    x = jax.random.normal(kx, (batch, num_channels, 16, 16), jnp.float32)
    params = init_params(kp, num_channels, num_classes)

    out = jax.block_until_ready(mlp_mnist_pallas(x, params))
    ref = reference(x, params)

    assert out.shape == (batch, num_classes)
    assert jnp.allclose(out, ref, atol=2e-3, rtol=2e-3), "mismatch vs reference"

    print("KERNEL_OK")
</pallas_src>

<mosaic_0001>
module attributes {stable_mosaic.version = 11 : i64} {
  func.func @_mlp_kernel(%arg0: i32, %arg1: memref<16x784xf32, #tpu.memory_space<vmem>>, %arg2: memref<896x256xbf16, #tpu.memory_space<vmem>>, %arg3: memref<1x256xf32, #tpu.memory_space<vmem>>, %arg4: memref<256x256xbf16, #tpu.memory_space<vmem>>, %arg5: memref<1x256xf32, #tpu.memory_space<vmem>>, %arg6: memref<256x128xbf16, #tpu.memory_space<vmem>>, %arg7: memref<1x128xf32, #tpu.memory_space<vmem>>, %arg8: memref<16x128xf32, #tpu.memory_space<vmem>>, %arg9: memref<16x896xbf16, #tpu.memory_space<vmem>>) attributes {dimension_semantics = [#tpu.dimension_semantics<parallel>], iteration_bounds = array<i64: 1>, scalar_prefetch = 0 : i64, scratch_operands = 1 : i64, tpu.core_type = #tpu.core_type<tc>, window_params = [{transform_indices = @transform_0, window_bounds = array<i64: 16, 784>}, {pipeline_mode = #tpu.pipeline_mode<synchronous>, transform_indices = @transform_1, window_bounds = array<i64: 896, 256>}, {pipeline_mode = #tpu.pipeline_mode<synchronous>, transform_indices = @transform_2, window_bounds = array<i64: 1, 256>}, {pipeline_mode = #tpu.pipeline_mode<synchronous>, transform_indices = @transform_3, window_bounds = array<i64: 256, 256>}, {pipeline_mode = #tpu.pipeline_mode<synchronous>, transform_indices = @transform_4, window_bounds = array<i64: 1, 256>}, {pipeline_mode = #tpu.pipeline_mode<synchronous>, transform_indices = @transform_5, window_bounds = array<i64: 256, 128>}, {pipeline_mode = #tpu.pipeline_mode<synchronous>, transform_indices = @transform_6, window_bounds = array<i64: 1, 128>}, {transform_indices = @transform_7, window_bounds = array<i64: 16, 128>}]} {
    %cst = arith.constant 0.000000e+00 : bf16
    %0 = vector.broadcast %cst : bf16 to vector<16x896xbf16>
    %c0 = arith.constant 0 : index
    %c0_0 = arith.constant 0 : index
    %1 = vector.load %arg9[%c0, %c0_0] : memref<16x896xbf16, #tpu.memory_space<vmem>>, vector<16x896xbf16>
    tpu.vector_store %arg9[%c0, %c0_0], %0 {strides = array<i32>} : memref<16x896xbf16, #tpu.memory_space<vmem>>, vector<16x896xbf16>,
    %c0_1 = arith.constant 0 : index
    %c0_2 = arith.constant 0 : index
    %2 = vector.load %arg1[%c0_1, %c0_2] : memref<16x784xf32, #tpu.memory_space<vmem>>, vector<16x784xf32>
    %3 = arith.truncf %2 : vector<16x784xf32> to vector<16x784xbf16>
    %c0_3 = arith.constant 0 : index
    %c0_4 = arith.constant 0 : index
    %4 = vector.load %arg9[%c0_3, %c0_4] : memref<16x896xbf16, #tpu.memory_space<vmem>>, vector<16x784xbf16>
    tpu.vector_store %arg9[%c0_3, %c0_4], %3 {strides = array<i32>} : memref<16x896xbf16, #tpu.memory_space<vmem>>, vector<16x784xbf16>,
    %c0_5 = arith.constant 0 : index
    %c0_6 = arith.constant 0 : index
    %5 = vector.load %arg9[%c0_5, %c0_6] : memref<16x896xbf16, #tpu.memory_space<vmem>>, vector<16x896xbf16>
    %c0_7 = arith.constant 0 : index
    %c0_8 = arith.constant 0 : index
    %6 = vector.load %arg2[%c0_7, %c0_8] : memref<896x256xbf16, #tpu.memory_space<vmem>>, vector<896x256xbf16>
    %cst_9 = arith.constant dense<0.000000e+00> : vector<16x256xf32>
    %7 = tpu.matmul %5, %6, %cst_9 {dimension_numbers = #tpu.dot_dimension_numbers<[1], [0], [0], [1], [0, 0, 1, 1], [], []>} : vector<16x896xbf16>, vector<896x256xbf16>, vector<16x256xf32> -> vector<16x256xf32>
    %c0_10 = arith.constant 0 : index
    %c0_11 = arith.constant 0 : index
    %8 = vector.load %arg3[%c0_10, %c0_11] : memref<1x256xf32, #tpu.memory_space<vmem>>, vector<1x256xf32>
    %9 = vector.broadcast %8 : vector<1x256xf32> to vector<16x256xf32>
    %10 = arith.addf %7, %9 : vector<16x256xf32>
    %cst_12 = arith.constant 0.000000e+00 : f32
    %11 = vector.broadcast %cst_12 : f32 to vector<16x256xf32>
    %12 = arith.maximumf %10, %11 : vector<16x256xf32>
    %13 = arith.truncf %12 : vector<16x256xf32> to vector<16x256xbf16>
    %c0_13 = arith.constant 0 : index
    %c0_14 = arith.constant 0 : index
    %14 = vector.load %arg4[%c0_13, %c0_14] : memref<256x256xbf16, #tpu.memory_space<vmem>>, vector<256x256xbf16>
    %cst_15 = arith.constant dense<0.000000e+00> : vector<16x256xf32>
    %15 = tpu.matmul %13, %14, %cst_15 {dimension_numbers = #tpu.dot_dimension_numbers<[1], [0], [0], [1], [0, 0, 1, 1], [], []>} : vector<16x256xbf16>, vector<256x256xbf16>, vector<16x256xf32> -> vector<16x256xf32>
    %c0_16 = arith.constant 0 : index
    %c0_17 = arith.constant 0 : index
    %16 = vector.load %arg5[%c0_16, %c0_17] : memref<1x256xf32, #tpu.memory_space<vmem>>, vector<1x256xf32>
    %17 = vector.broadcast %16 : vector<1x256xf32> to vector<16x256xf32>
    %18 = arith.addf %15, %17 : vector<16x256xf32>
    %cst_18 = arith.constant 0.000000e+00 : f32
    %19 = vector.broadcast %cst_18 : f32 to vector<16x256xf32>
    %20 = arith.maximumf %18, %19 : vector<16x256xf32>
    %21 = arith.truncf %20 : vector<16x256xf32> to vector<16x256xbf16>
    %c0_19 = arith.constant 0 : index
    %c0_20 = arith.constant 0 : index
    %22 = vector.load %arg6[%c0_19, %c0_20] : memref<256x128xbf16, #tpu.memory_space<vmem>>, vector<256x128xbf16>
    %cst_21 = arith.constant dense<0.000000e+00> : vector<16x128xf32>
    %23 = tpu.matmul %21, %22, %cst_21 {dimension_numbers = #tpu.dot_dimension_numbers<[1], [0], [0], [1], [0, 0, 1, 1], [], []>} : vector<16x256xbf16>, vector<256x128xbf16>, vector<16x128xf32> -> vector<16x128xf32>
    %c0_22 = arith.constant 0 : index
    %c0_23 = arith.constant 0 : index
    %24 = vector.load %arg7[%c0_22, %c0_23] : memref<1x128xf32, #tpu.memory_space<vmem>>, vector<1x128xf32>
    %25 = vector.broadcast %24 : vector<1x128xf32> to vector<16x128xf32>
    %26 = arith.addf %23, %25 : vector<16x128xf32>
    %c0_24 = arith.constant 0 : index
    %c0_25 = arith.constant 0 : index
    %27 = vector.load %arg8[%c0_24, %c0_25] : memref<16x128xf32, #tpu.memory_space<vmem>>, vector<16x128xf32>
    tpu.vector_store %arg8[%c0_24, %c0_25], %26 {strides = array<i32>} : memref<16x128xf32, #tpu.memory_space<vmem>>, vector<16x128xf32>,
    return
  }
  func.func @transform_0(%arg0: i32) -> (i32, i32) {
    %c0_i32 = arith.constant 0 : i32
    %c0_i32_0 = arith.constant 0 : i32
    return %arg0, %c0_i32 : i32, i32
  }
  func.func @transform_1(%arg0: i32) -> (i32, i32) {
    %c0_i32 = arith.constant 0 : i32
    %c0_i32_0 = arith.constant 0 : i32
    %c0_i32_1 = arith.constant 0 : i32
    return %c0_i32, %c0_i32_0 : i32, i32
  }
  func.func @transform_2(%arg0: i32) -> (i32, i32) {
    %c0_i32 = arith.constant 0 : i32
    %c0_i32_0 = arith.constant 0 : i32
    %c0_i32_1 = arith.constant 0 : i32
    return %c0_i32, %c0_i32_0 : i32, i32
  }
  func.func @transform_3(%arg0: i32) -> (i32, i32) {
    %c0_i32 = arith.constant 0 : i32
    %c0_i32_0 = arith.constant 0 : i32
    %c0_i32_1 = arith.constant 0 : i32
    return %c0_i32, %c0_i32_0 : i32, i32
  }
  func.func @transform_4(%arg0: i32) -> (i32, i32) {
    %c0_i32 = arith.constant 0 : i32
    %c0_i32_0 = arith.constant 0 : i32
    %c0_i32_1 = arith.constant 0 : i32
    return %c0_i32, %c0_i32_0 : i32, i32
  }
  func.func @transform_5(%arg0: i32) -> (i32, i32) {
    %c0_i32 = arith.constant 0 : i32
    %c0_i32_0 = arith.constant 0 : i32
    %c0_i32_1 = arith.constant 0 : i32
    return %c0_i32, %c0_i32_0 : i32, i32
  }
  func.func @transform_6(%arg0: i32) -> (i32, i32) {
    %c0_i32 = arith.constant 0 : i32
    %c0_i32_0 = arith.constant 0 : i32
    %c0_i32_1 = arith.constant 0 : i32
    return %c0_i32, %c0_i32_0 : i32, i32
  }
  func.func @transform_7(%arg0: i32) -> (i32, i32) {
    %c0_i32 = arith.constant 0 : i32
    %c0_i32_0 = arith.constant 0 : i32
    return %arg0, %c0_i32 : i32, i32
  }
}

</mosaic_0001>

<bundles_post_ra>
// kernel: tpu_custom_call.1
= control target key start
LH: loop header
LB: loop body
LE: loop exit
PB: predicated region body
PF: predicated region fallthrough
CT: control target
= control target key end

     0   :  { %12 = vsyncpa [#allocation4], 0  ;;  %s2631_s0 = inlined_call_operand.hbm [shape: f32[16,784], index: 0, kind: input, shape index: {}]   ;;  %s2632_s1 = inlined_call_operand.hbm [shape: bf16[896,256], index: 1, kind: input, shape index: {}]   ;;  %s2633_s2 = inlined_call_operand.hbm [shape: f32[1,256], index: 2, kind: input, shape index: {}]   ;;  %s2634_s3 = inlined_call_operand.hbm [shape: bf16[256,256], index: 3, kind: input, shape index: {}]   ;;  %s2635_s4 = inlined_call_operand.vmem [shape: f32[1,256], index: 4, kind: input, shape index: {}]   ;;  %s2636_s5 = inlined_call_operand.hbm [shape: bf16[256,128], index: 5, kind: input, shape index: {}]   ;;  %s2637_s6 = inlined_call_operand.vmem [shape: f32[1,128], index: 6, kind: input, shape index: {}]   ;;  %s2638_s7 = inlined_call_operand.hbm [shape: f32[16,128], index: 7, kind: output, shape index: {}]  }
   0x1   :  { %13 = vsyncpa [#allocation7], 0 }
   0x2   :  { %14 = vsyncpa [#allocation10], 0  ;;  %s33_s26 = sshll.u32 %s2632_s1, 4  ;;  %s34_s26 = int_to_ptr.hbm [resolvable:$true] %s33_s26 }
   0x3   :  { %15 = vsyncpa [#allocation5], 0  ;;  %s2511_s27 = smov [#allocation6]   ;;  %s57_s8 = sshll.u32 %s2634_s3, 4  ;;  %s58_s8 = int_to_ptr.hbm [resolvable:$true] %s57_s8 }
   0x4   :  { %s35_s28 = sshll.u32 %s2511_s27, 4  ;;  %s2512_s9 = smov 128   ;;  %s36_s28 = int_to_ptr.vmem [resolvable:$true] %s35_s28 }
   0x5   :  { %s2513_s10 = smov 8   ;;  %s2514_s11 = smov [#allocation9]  }
   0x6   :  { %41 = dma.hbm_to_vmem [thread:$0]  %s34_s26, 14336, %s36_s28, [#allocation7], %s2512_s9, %s2512_s9, %s2513_s10  }
   0x7   :  { %s59_s12 = sshll.u32 %s2514_s11, 4  ;;  %s20_s14 = sshll.u32 %s2631_s0, 4  ;;  %s60_s12 = int_to_ptr.vmem [resolvable:$true] %s59_s12  ;;  %s21_s14 = int_to_ptr.hbm [resolvable:$true] %s20_s14 }
   0x8   :  { %65 = dma.hbm_to_vmem [thread:$0]  %s58_s8, 4096, %s60_s12, [#allocation10], %s2512_s9, %s2512_s9, %s2513_s10  }
   0x9   :  { %s2515_s3 = smov [#allocation3]   ;;  %s47_s18 = sshll.u32 %s2633_s2, 4  ;;  %s48_s18 = int_to_ptr.hbm [resolvable:$true] %s47_s18 }
   0xa   :  { %s22_s15 = sshll.u32 %s2515_s3, 4  ;;  %s2516_s19 = smov 896   ;;  %s23_s15 = int_to_ptr.vmem [resolvable:$true] %s22_s15 }
   0xb   :  { %s2517_s20 = smov 56   ;;  %s2518_s21 = smov [#allocation8]  }
   0xc   :  { %28 = dma.hbm_to_vmem [thread:$0]  %s21_s14, 1792, %s23_s15, [#allocation4], %s2516_s19, %s2516_s19, %s2517_s20  }
   0xd   :  { %s49_s22 = sshll.u32 %s2518_s21, 4  ;;  %s72_s24 = sshll.u32 %s2636_s5, 4  ;;  %s50_s22 = int_to_ptr.vmem [resolvable:$true] %s49_s22  ;;  %s73_s24 = int_to_ptr.hbm [resolvable:$true] %s72_s24 }
   0xe   :  { %52 = dma.hbm_to_vmem [thread:$0]  %s48_s18, 32, %s50_s22, [#allocation7]  }
   0xf   :  { %s2519_s25 = smov [#allocation11]   ;;  %s2520_s27 = smov 64  }
  0x10   :  { %s74_s26 = sshll.u32 %s2519_s25, 4  ;;  %s2521_s28 = smov 4   ;;  %s75_s26 = int_to_ptr.vmem [resolvable:$true] %s74_s26 }
  0x11   :  { %80 = dma.hbm_to_vmem [thread:$0]  %s73_s24, 2048, %s75_s26, [#allocation10], %s2520_s27, %s2520_s27, %s2521_s28  }
  0x12   :  { %2503 = dma.done.wait [#allocation4], 1792  }
  0x13   :  { %2504 = vsyncadd [#allocation4], 4294965504 }
  0x14   :  { %2505 = dma.done.wait [#allocation7], 14368  }
  0x15   :  { %2506 = vsyncadd [#allocation7], 4294952928 }
  0x16   :  { %2507 = dma.done.wait [#allocation10], 6144  }
  0x17   :  { %2508 = vsyncadd [#allocation10], 4294961152  ;;  %v1596_v0 = vld [vmem:[#allocation6 + $0x70] sm:$0xf]  ;;  %v2200_v1 = vld [vmem:[#allocation6 + $0x74] sm:$0xf0] }
  0x18   :  { %v1660_v2 = vld [vmem:[#allocation6 + $0xf0] sm:$0xf]  ;;  %v1597_v3 = vor.u32 %v2200_v1, %v1596_v0  ;;  %v2216_v4 = vld [vmem:[#allocation6 + $0xf4] sm:$0xf0]  ;;  %v1588_v9 = vld [vmem:[#allocation6 + $0x60] sm:$0xf] }
  0x19   :  { %v1724_v5 = vld [vmem:[#allocation6 + $0x170] sm:$0xf]  ;;  %v2232_v6 = vld [vmem:[#allocation6 + $0x174] sm:$0xf0]  ;;  %v1661_v7 = vor.u32 %v2216_v4, %v1660_v2  ;;  %v2198_v10 = vld [vmem:[#allocation6 + $0x64] sm:$0xf0] }
  0x1a   :  { %v1725_v8 = vor.u32 %v2232_v6, %v1724_v5  ;;  %v1652_v11 = vld [vmem:[#allocation6 + $0xe0] sm:$0xf]  ;;  %865 = vmatpush.bf16.msra.mxu0 %v1597_v3  ;;  %v1589_v12 = vor.u32 %v2198_v10, %v1588_v9  ;;  %v2214_v13 = vld [vmem:[#allocation6 + $0xe4] sm:$0xf0]  ;;  %v1788_v18 = vld [vmem:[#allocation6 + $0x1f0] sm:$0xf] }
  0x1b   :  { %v1716_v14 = vld [vmem:[#allocation6 + $0x160] sm:$0xf]  ;;  %v2230_v15 = vld [vmem:[#allocation6 + $0x164] sm:$0xf0]  ;;  %879 = vmatpush.bf16.msra.mxu1 %v1661_v7  ;;  %v1653_v16 = vor.u32 %v2214_v13, %v1652_v11  ;;  %v2248_v19 = vld [vmem:[#allocation6 + $0x1f4] sm:$0xf0] }
  0x1c   :  { %893 = vmatpush.bf16.msra.mxu2 %v1725_v8  ;;  %v1717_v17 = vor.u32 %v2230_v15, %v1716_v14  ;;  %v1580_v20 = vld [vmem:[#allocation6 + $0x50] sm:$0xf]  ;;  %v1789_v21 = vor.u32 %v2248_v19, %v1788_v18  ;;  %v2196_v22 = vld [vmem:[#allocation6 + $0x54] sm:$0xf0]  ;;  %v1780_v27 = vld [vmem:[#allocation6 + $0x1e0] sm:$0xf] }
  0x1d   :  { %v1644_v23 = vld [vmem:[#allocation6 + $0xd0] sm:$0xf]  ;;  %v2212_v24 = vld [vmem:[#allocation6 + $0xd4] sm:$0xf0]  ;;  %v1581_v28 = vor.u32 %v2196_v22, %v1580_v20  ;;  %v2246_v29 = vld [vmem:[#allocation6 + $0x1e4] sm:$0xf0] }
  0x1e   :  { %v1708_v25 = vld [vmem:[#allocation6 + $0x150] sm:$0xf]  ;;  %v2228_v26 = vld [vmem:[#allocation6 + $0x154] sm:$0xf0]  ;;  %866 = vmatpush.bf16.msra.mxu0 %v1589_v12  ;;  %907 = vmatpush.bf16.msra.mxu3 %v1789_v21  ;;  %v1572_v30 = vld [vmem:[#allocation6 + $0x40] sm:$0xf]  ;;  %v1645_v32 = vor.u32 %v2212_v24, %v1644_v23  ;;  %v1781_v34 = vor.u32 %v2246_v29, %v1780_v27 }
  0x1f   :  { %v2194_v31 = vld [vmem:[#allocation6 + $0x44] sm:$0xf0]  ;;  %880 = vmatpush.bf16.msra.mxu1 %v1653_v16  ;;  %v1709_v33 = vor.u32 %v2228_v26, %v1708_v25  ;;  %v1636_v35 = vld [vmem:[#allocation6 + $0xc0] sm:$0xf]  ;;  %v1772_v39 = vld [vmem:[#allocation6 + $0x1d0] sm:$0xf] }
  0x20   :  { %894 = vmatpush.bf16.msra.mxu2 %v1717_v17  ;;  %v2210_v36 = vld [vmem:[#allocation6 + $0xc4] sm:$0xf0]  ;;  %v1700_v37 = vld [vmem:[#allocation6 + $0x140] sm:$0xf]  ;;  %v2244_v40 = vld [vmem:[#allocation6 + $0x1d4] sm:$0xf0]  ;;  %v1573_v41 = vor.u32 %v2194_v31, %v1572_v30 }
  0x21   :  { %v2226_v38 = vld [vmem:[#allocation6 + $0x144] sm:$0xf0]  ;;  %v1773_v42 = vor.u32 %v2244_v40, %v1772_v39  ;;  %v1564_v43 = vld [vmem:[#allocation6 + $0x30] sm:$0xf]  ;;  %v2192_v44 = vld [vmem:[#allocation6 + $0x34] sm:$0xf0]  ;;  %v1637_v45 = vor.u32 %v2210_v36, %v1636_v35 }
  0x22   :  { %867 = vmatpush.bf16.msra.mxu0 %v1581_v28  ;;  %908 = vmatpush.bf16.msra.mxu3 %v1781_v34  ;;  %v1701_v46 = vor.u32 %v2226_v38, %v1700_v37  ;;  %v1628_v47 = vld [vmem:[#allocation6 + $0xb0] sm:$0xf]  ;;  %v1764_v48 = vld [vmem:[#allocation6 + $0x1c0] sm:$0xf]  ;;  %v2242_v49 = vld [vmem:[#allocation6 + $0x1c4] sm:$0xf0]  ;;  %v1565_v53 = vor.u32 %v2192_v44, %v1564_v43 }
  0x23   :  { %881 = vmatpush.bf16.msra.mxu1 %v1645_v32  ;;  %v2208_v50 = vld [vmem:[#allocation6 + $0xb4] sm:$0xf0]  ;;  %v1692_v51 = vld [vmem:[#allocation6 + $0x130] sm:$0xf]  ;;  %v1765_v54 = vor.u32 %v2242_v49, %v1764_v48  ;;  %v1556_v55 = vld [vmem:[#allocation6 + $0x20] sm:$0xf] }
  0x24   :  { %895 = vmatpush.bf16.msra.mxu2 %v1709_v33  ;;  %v2224_v52 = vld [vmem:[#allocation6 + $0x134] sm:$0xf0]  ;;  %v2190_v56 = vld [vmem:[#allocation6 + $0x24] sm:$0xf0]  ;;  %v1629_v57 = vor.u32 %v2208_v50, %v1628_v47  ;;  %v1620_v59 = vld [vmem:[#allocation6 + $0xa0] sm:$0xf] }
  0x25   :  { %v1693_v58 = vor.u32 %v2224_v52, %v1692_v51  ;;  %v1756_v60 = vld [vmem:[#allocation6 + $0x1b0] sm:$0xf]  ;;  %v2240_v61 = vld [vmem:[#allocation6 + $0x1b4] sm:$0xf0]  ;;  %v2206_v62 = vld [vmem:[#allocation6 + $0xa4] sm:$0xf0]  ;;  %v1557_v1 = vor.u32 %v2190_v56, %v1556_v55 }
  0x26   :  { %868 = vmatpush.bf16.msra.mxu0 %v1573_v41  ;;  %909 = vmatpush.bf16.msra.mxu3 %v1773_v42  ;;  %v1684_v63 = vld [vmem:[#allocation6 + $0x120] sm:$0xf]  ;;  %v2222_v0 = vld [vmem:[#allocation6 + $0x124] sm:$0xf0]  ;;  %v1757_v2 = vor.u32 %v2240_v61, %v1756_v60  ;;  %v1548_v3 = vld [vmem:[#allocation6 + $0x10] sm:$0xf]  ;;  %v1621_v5 = vor.u32 %v2206_v62, %v1620_v59 }
  0x27   :  { %882 = vmatpush.bf16.msra.mxu1 %v1637_v45  ;;  %v2188_v4 = vld [vmem:[#allocation6 + $0x14] sm:$0xf0]  ;;  %v1685_v6 = vor.u32 %v2222_v0, %v1684_v63  ;;  %v1612_v7 = vld [vmem:[#allocation6 + $0x90] sm:$0xf]  ;;  %v1748_v8 = vld [vmem:[#allocation6 + $0x1a0] sm:$0xf] }
  0x28   :  { %896 = vmatpush.bf16.msra.mxu2 %v1701_v46  ;;  %v2238_v9 = vld [vmem:[#allocation6 + $0x1a4] sm:$0xf0]  ;;  %v2204_v10 = vld [vmem:[#allocation6 + $0x94] sm:$0xf0]  ;;  %v1676_v11 = vld [vmem:[#allocation6 + $0x110] sm:$0xf]  ;;  %v1549_v13 = vor.u32 %v2188_v4, %v1548_v3 }
  0x29   :  { %v2220_v12 = vld [vmem:[#allocation6 + $0x114] sm:$0xf0]  ;;  %v1749_v14 = vor.u32 %v2238_v9, %v1748_v8  ;;  %v1540_v15 = vld [vmem:[#allocation6] sm:$0xf]  ;;  %v2186_v16 = vld [vmem:[#allocation6 + $0x4] sm:$0xf0]  ;;  %v1613_v18 = vor.u32 %v2204_v10, %v1612_v7 }
  0x2a   :  { %869 = vmatpush.bf16.msra.mxu0 %v1565_v53  ;;  %910 = vmatpush.bf16.msra.mxu3 %v1765_v54  ;;  %v1604_v17 = vld [vmem:[#allocation6 + $0x80] sm:$0xf]  ;;  %v1677_v19 = vor.u32 %v2220_v12, %v1676_v11  ;;  %v2202_v20 = vld [vmem:[#allocation6 + $0x84] sm:$0xf0]  ;;  %v1740_v21 = vld [vmem:[#allocation6 + $0x190] sm:$0xf]  ;;  %v1541_v29 = vor.u32 %v2186_v16, %v1540_v15 }
  0x2b   :  { %883 = vmatpush.bf16.msra.mxu1 %v1629_v57  ;;  %v2236_v22 = vld [vmem:[#allocation6 + $0x194] sm:$0xf0]  ;;  %v1668_v23 = vld [vmem:[#allocation6 + $0x100] sm:$0xf]  ;;  %v2218_v24 = vld [vmem:[#allocation6 + $0x104] sm:$0xf0]  ;;  %v1605_v34 = vor.u32 %v2202_v20, %v1604_v17 }
  0x2c   :  { %897 = vmatpush.bf16.msra.mxu2 %v1693_v58  ;;  %v1852_v25 = vld [vmem:[#allocation6 + $0x270] sm:$0xf]  ;;  %v2264_v26 = vld [vmem:[#allocation6 + $0x274] sm:$0xf0]  ;;  %v1741_v30 = vor.u32 %v2236_v22, %v1740_v21  ;;  %v1732_v33 = vld [vmem:[#allocation6 + $0x180] sm:$0xf]  ;;  %v1669_v35 = vor.u32 %v2218_v24, %v1668_v23 }
  0x2d   :  { %v1916_v27 = vld [vmem:[#allocation6 + $0x2f0] sm:$0xf]  ;;  %v2280_v28 = vld [vmem:[#allocation6 + $0x2f4] sm:$0xf0]  ;;  %v2234_v36 = vld [vmem:[#allocation6 + $0x184] sm:$0xf0]  ;;  %v1853_v39 = vor.u32 %v2264_v26, %v1852_v25 }
  0x2e   :  { %870 = vmatpush.bf16.msra.mxu0 %v1557_v1  ;;  %911 = vmatpush.bf16.msra.mxu3 %v1757_v2  ;;  %v1980_v31 = vld [vmem:[#allocation6 + $0x370] sm:$0xf]  ;;  %v2296_v32 = vld [vmem:[#allocation6 + $0x374] sm:$0xf0]  ;;  %v1844_v37 = vld [vmem:[#allocation6 + $0x260] sm:$0xf]  ;;  %v1917_v40 = vor.u32 %v2280_v28, %v1916_v27  ;;  %v1733_v48 = vor.u32 %v2234_v36, %v1732_v33 }
  0x2f   :  { %884 = vmatpush.bf16.msra.mxu1 %v1621_v5  ;;  %v2262_v38 = vld [vmem:[#allocation6 + $0x264] sm:$0xf0]  ;;  %v1908_v41 = vld [vmem:[#allocation6 + $0x2e0] sm:$0xf]  ;;  %v2199_v42 = vld [vmem:[#allocation6 + $0x74] sm:$0xf]  ;;  %v1981_v44 = vor.u32 %v2296_v32, %v1980_v31 }
  0x30   :  { %898 = vmatpush.bf16.msra.mxu2 %v1685_v6  ;;  %v1598_v43 = vld [vmem:[#allocation6 + $0x78] sm:$0xf0]  ;;  %v2278_v45 = vld [vmem:[#allocation6 + $0x2e4] sm:$0xf0]  ;;  %v1972_v46 = vld [vmem:[#allocation6 + $0x360] sm:$0xf]  ;;  %v1845_v61 = vor.u32 %v2262_v38, %v1844_v37 }
  0x31   :  { %v2294_v47 = vld [vmem:[#allocation6 + $0x364] sm:$0xf0]  ;;  %v2197_v49 = vld [vmem:[#allocation6 + $0x64] sm:$0xf]  ;;  %v1590_v50 = vld [vmem:[#allocation6 + $0x68] sm:$0xf0]  ;;  %v1601_v53 = vor.u32 %v2199_v42, %v1598_v43  ;;  %v1909_v62 = vor.u32 %v2278_v45, %v1908_v41 }
  0x32   :  { %871 = vmatpush.bf16.msra.mxu0 %v1549_v13  ;;  %912 = vmatpush.bf16.msra.mxu3 %v1749_v14  ;;  %v112_v51 = vld [vmem:[#allocation3] sm:$0xff]  ;;  %v113_v52 = vld [vmem:[#allocation3 + $0x8] sm:$0xff]  ;;  %v119_v56 = vld [vmem:[#allocation3 + $0x38] sm:$0xff]  ;;  %v2522_v59 = vmov 0   ;;  %v1973_v3 = vor.u32 %v2294_v47, %v1972_v46  ;;  %v1593_v10 = vor.u32 %v2197_v49, %v1590_v50  ;;  %vm137_vm0 = vcmask 125952   ;;  %s2523_s30 = smov [#allocation12]  }
  0x33   :  { %885 = vmatpush.bf16.msra.mxu1 %v1613_v18  ;;  %v1836_v54 = vld [vmem:[#allocation6 + $0x250] sm:$0xf]  ;;  %v2260_v55 = vld [vmem:[#allocation6 + $0x254] sm:$0xf0]  ;;  %v126_v58 = vpack.c.bf16 %v113_v52, %v112_v51  ;;  %107 = vst [vmem:[#allocation2 + $0x18] sm:$0xf] %v2522_v59 }
  0x34   :  { %899 = vmatpush.bf16.msra.mxu2 %v1677_v19  ;;  %v120_v57 = vld [vmem:[#allocation3 + $0x40] sm:$0xff]  ;;  %v114_v60 = vld [vmem:[#allocation3 + $0x10] sm:$0xff]  ;;  %111 = vst [vmem:[#allocation2 + $0x34] sm:$0xf] %v2522_v59  ;;  %v115_v0 = vld [vmem:[#allocation3 + $0x18] sm:$0xff]  ;;  %v1837_v12 = vor.u32 %v2260_v55, %v1836_v54  ;;  %s1493_s8 = sshll.u32 %s2523_s30, 4  ;;  %s1494_s8 = int_to_ptr.vmem [resolvable:$true] %s1493_s8 }
  0x35   :  { %v130_v63 = vpack.c.bf16 %v120_v57, %v119_v56  ;;  %v121_v1 = vld [vmem:[#allocation3 + $0x48] sm:$0xff]  ;;  %v122_v2 = vld [vmem:[#allocation3 + $0x50] sm:$0xff]  ;;  %v1900_v4 = vld [vmem:[#allocation6 + $0x2d0] sm:$0xf]  ;;  %134 = vst [vmem:[#allocation2] sm:$0xff] %v126_v58  ;;  %v127_v6 = vpack.c.bf16 %v115_v0, %v114_v60  ;;  %s1495_s13 = sshll.u32 %s2638_s7, 4  ;;  %s1496_s13 = int_to_ptr.hbm [resolvable:$true] %s1495_s13 }
  0x36   :  { %872 = vmatpush.bf16.msra.mxu0 %v1541_v29  ;;  %913 = vmatpush.bf16.msra.mxu3 %v1741_v30  ;;  %v2276_v5 = vld [vmem:[#allocation6 + $0x2d4] sm:$0xf0]  ;;  %v131_v7 = vpack.c.bf16 %v122_v2, %v121_v1  ;;  %v1964_v8 = vld [vmem:[#allocation6 + $0x350] sm:$0xf]  ;;  %v1828_v11 = vld [vmem:[#allocation6 + $0x240] sm:$0xf] }
  0x37   :  { %886 = vmatpush.bf16.msra.mxu1 %v1605_v34  ;;  %v2292_v9 = vld [vmem:[#allocation6 + $0x354] sm:$0xf0]  ;;  %139 = vst [vmem:[#allocation2 + $0x1c] sm:$0xff] %v130_v63  ;;  %v1901_v13 = vor.u32 %v2276_v5, %v1900_v4  ;;  %v2195_v14 = vld [vmem:[#allocation6 + $0x54] sm:$0xf] }
  0x38   :  { %900 = vmatpush.bf16.msra.mxu2 %v1669_v35  ;;  %135 = vst [vmem:[#allocation2 + $0x8] sm:$0xff] %v127_v6  ;;  %v1582_v15 = vld [vmem:[#allocation6 + $0x58] sm:$0xf0]  ;;  %v1965_v16 = vor.u32 %v2292_v9, %v1964_v8  ;;  %v2258_v17 = vld [vmem:[#allocation6 + $0x244] sm:$0xf0]  ;;  %v116_v34 = vld [vmem:[#allocation3 + $0x20] sm:$0xff] }
  0x39   :  { %140 = vst [vmem:[#allocation2 + $0x24] sm:$0xff] %v131_v7  ;;  %v1892_v18 = vld [vmem:[#allocation6 + $0x2c0] sm:$0xf]  ;;  %v2274_v19 = vld [vmem:[#allocation6 + $0x2c4] sm:$0xf0]  ;;  %v1585_v22 = vor.u32 %v2195_v14, %v1582_v15  ;;  %v1829_v28 = vor.u32 %v2258_v17, %v1828_v11  ;;  %v117_v35 = vld [vmem:[#allocation3 + $0x28] sm:$0xff] }
  0x3a   :  { %921 = vmatpush.bf16.msrb.mxu0 %v1853_v39  ;;  %914 = vmatpush.bf16.msra.mxu3 %v1733_v48  ;;  %v1956_v20 = vld [vmem:[#allocation6 + $0x340] sm:$0xf]  ;;  %v2290_v21 = vld [vmem:[#allocation6 + $0x344] sm:$0xf0]  ;;  %v1820_v23 = vld [vmem:[#allocation6 + $0x230] sm:$0xf]  ;;  %v1893_v29 = vor.u32 %v2274_v19, %v1892_v18  ;;  %v128_v60 = vpack.c.bf16 %v117_v35, %v116_v34 }
  0x3b   :  { %935 = vmatpush.bf16.msrb.mxu1 %v1917_v40  ;;  %v2256_v24 = vld [vmem:[#allocation6 + $0x234] sm:$0xf0]  ;;  %v1884_v25 = vld [vmem:[#allocation6 + $0x2b0] sm:$0xf]  ;;  %v2193_v27 = vld [vmem:[#allocation6 + $0x44] sm:$0xf]  ;;  %v1957_v36 = vor.u32 %v2290_v21, %v1956_v20 }
  0x3c   :  { %949 = vmatpush.bf16.msrb.mxu2 %v1981_v44  ;;  %v2272_v26 = vld [vmem:[#allocation6 + $0x2b4] sm:$0xf0]  ;;  %v1948_v31 = vld [vmem:[#allocation6 + $0x330] sm:$0xf]  ;;  %v2178_v32 = vld [vmem:[#allocation2 + $0x4] sm:$0xf]  ;;  %v1821_v50 = vor.u32 %v2256_v24, %v1820_v23 }
  0x3d   :  { %v1512_v30 = vld [vmem:[#allocation2] sm:$0xf]  ;;  %v1574_v33 = vld [vmem:[#allocation6 + $0x48] sm:$0xf0]  ;;  %v124_v48 = vld [vmem:[#allocation3 + $0x60] sm:$0xff]  ;;  %v1885_v51 = vor.u32 %v2272_v26, %v1884_v25  ;;  %136 = vst [vmem:[#allocation2 + $0x10] sm:$0xff] %v128_v60 }
  0x3e   :  { %963 = vmatpush.bf16.msrb.mxu3 %v1601_v53  ;;  %922 = vmatpush.bf16.msrb.mxu0 %v1845_v61  ;;  %v2181_v37 = vld [vmem:[#allocation2 + $0x18] sm:$0xf0]  ;;  %v2288_v38 = vld [vmem:[#allocation6 + $0x334] sm:$0xf0]  ;;  %v123_v44 = vld [vmem:[#allocation3 + $0x58] sm:$0xff]  ;;  %v1577_v46 = vor.u32 %v2193_v27, %v1574_v33 }
  0x3f   :  { %936 = vmatpush.bf16.msrb.mxu1 %v1909_v62  ;;  %v1514_v39 = vld [vmem:[#allocation2 + $0x1c] sm:$0xf0]  ;;  %v2585_v40 = vor.u32 %v2181_v37, %v1512_v30  ;;  %v1520_v41 = vld [vmem:[#allocation2 + $0x8] sm:$0xf]  ;;  %v2179_v43 = vld [vmem:[#allocation2 + $0xc] sm:$0xf]  ;;  %v1949_v55 = vor.u32 %v2288_v38, %v1948_v31  ;;  %v132_v63 = vpack.c.bf16 %v124_v48, %v123_v44 }
  0x40   :  { %950 = vmatpush.bf16.msrb.mxu2 %v1973_v3  ;;  %v2587_v42 = vor.u32 %v2178_v32, %v1514_v39  ;;  %v2182_v45 = vld [vmem:[#allocation2 + $0x20] sm:$0xf0]  ;;  %v1522_v47 = vld [vmem:[#allocation2 + $0x24] sm:$0xf0]  ;;  %v2191_v53 = vld [vmem:[#allocation6 + $0x34] sm:$0xf] }
  0x41   :  { %v2589_v49 = vor.u32 %v2182_v45, %v1520_v41  ;;  %v1812_v52 = vld [vmem:[#allocation6 + $0x220] sm:$0xf]  ;;  %v1566_v54 = vld [vmem:[#allocation6 + $0x38] sm:$0xf0]  ;;  %873 = vmatmul.bf16.vlgmr.msra.gmra.mxu0 %v2585_v40  ;;  %v2254_v56 = vld [vmem:[#allocation6 + $0x224] sm:$0xf0]  ;;  %v2592_v59 = vor.u32 %v2179_v43, %v1522_v47 }
  0x42   :  { %964 = vmatpush.bf16.msrb.mxu3 %v1593_v10  ;;  %923 = vmatpush.bf16.msrb.mxu0 %v1837_v12  ;;  %v1876_v57 = vld [vmem:[#allocation6 + $0x2a0] sm:$0xf]  ;;  %v2270_v58 = vld [vmem:[#allocation6 + $0x2a4] sm:$0xf0]  ;;  %v1569_v0 = vor.u32 %v2191_v53, %v1566_v54  ;;  %v1804_v1 = vld [vmem:[#allocation6 + $0x210] sm:$0xf]  ;;  %v1813_v3 = vor.u32 %v2254_v56, %v1812_v52 }
  0x43   :  { %937 = vmatpush.bf16.msrb.mxu1 %v1901_v13  ;;  %901 = vmatmul.bf16.vlgmr.msra.gmra.mxu2 %v2589_v49  ;;  %v1940_v61 = vld [vmem:[#allocation6 + $0x320] sm:$0xf]  ;;  %v2286_v62 = vld [vmem:[#allocation6 + $0x324] sm:$0xf0]  ;;  %v2252_v2 = vld [vmem:[#allocation6 + $0x214] sm:$0xf0]  ;;  %v1877_v4 = vor.u32 %v2270_v58, %v1876_v57 }
  0x44   :  { %951 = vmatpush.bf16.msrb.mxu2 %v1965_v16  ;;  %887 = vmatmul.bf16.vlgmr.msra.gmra.mxu1 %v2587_v42  ;;  %v1868_v5 = vld [vmem:[#allocation6 + $0x290] sm:$0xf]  ;;  %v2189_v6 = vld [vmem:[#allocation6 + $0x24] sm:$0xf]  ;;  %v1558_v7 = vld [vmem:[#allocation6 + $0x28] sm:$0xf0]  ;;  %v1941_v8 = vor.u32 %v2286_v62, %v1940_v61  ;;  %v1805_v21 = vor.u32 %v2252_v2, %v1804_v1 }
  0x45   :  { %915 = vmatmul.bf16.vlgmr.msra.gmra.mxu3 %v2592_v59  ;;  %v2268_v9 = vld [vmem:[#allocation6 + $0x294] sm:$0xf0]  ;;  %v118_v10 = vld [vmem:[#allocation3 + $0x30] sm:$0xff]  ;;  %v1932_v12 = vld [vmem:[#allocation6 + $0x310] sm:$0xf]  ;;  %141 = vst [vmem:[#allocation2 + $0x2c] sm:$0xff] %v132_v63  ;;  %v1561_v16 = vor.u32 %v2189_v6, %v1558_v7 }
  0x46   :  { %965 = vmatpush.bf16.msrb.mxu3 %v1585_v22  ;;  %924 = vmatpush.bf16.msrb.mxu0 %v1829_v28  ;;  %v125_v11 = vld [vmem:[#allocation3 + $0x68] sm:$0xff]  ;;  %v129_v14 = vpack.c.bf16 %v118_v10, %v118_v10  ;;  %v1796_v17 = vld [vmem:[#allocation6 + $0x200] sm:$0xf]  ;;  %v2250_v18 = vld [vmem:[#allocation6 + $0x204] sm:$0xf0]  ;;  %v1869_v22 = vor.u32 %v2268_v9, %v1868_v5 }
  0x47   :  { %938 = vmatpush.bf16.msrb.mxu1 %v1893_v29  ;;  %v2284_v13 = vld [vmem:[#allocation6 + $0x314] sm:$0xf0]  ;;  %v133_v15 = vpack.c.bf16 %v125_v11, %v125_v11  ;;  %v1860_v19 = vld [vmem:[#allocation6 + $0x280] sm:$0xf]  ;;  %v2266_v20 = vld [vmem:[#allocation6 + $0x284] sm:$0xf0]  ;;  %v1797_v37 = vor.u32 %v2250_v18, %v1796_v17 }
  0x48   :  { %952 = vmatpush.bf16.msrb.mxu2 %v1957_v36  ;;  %v1924_v23 = vld [vmem:[#allocation6 + $0x300] sm:$0xf]  ;;  %v2282_v24 = vld [vmem:[#allocation6 + $0x304] sm:$0xf0]  ;;  %v2187_v25 = vld [vmem:[#allocation6 + $0x14] sm:$0xf]  ;;  %v1933_v27 = vor.u32 %v2284_v13, %v1932_v12  ;;  %v1861_v38 = vor.u32 %v2266_v20, %v1860_v19 }
  0x49   :  { %v1550_v26 = vld [vmem:[#allocation6 + $0x18] sm:$0xf0]  ;;  %138 = vst.msk [vmem:[#allocation2 + $0x18] sm:$0xf] %vm137_vm0, %v129_v14  ;;  %v2215_v28 = vld [vmem:[#allocation6 + $0xf4] sm:$0xf]  ;;  %v1925_v45 = vor.u32 %v2282_v24, %v1924_v23 }
  0x4a   :  { %966 = vmatpush.bf16.msrb.mxu3 %v1577_v46  ;;  %925 = vmatpush.bf16.msrb.mxu0 %v1821_v50  ;;  %v1662_v29 = vld [vmem:[#allocation6 + $0xf8] sm:$0xf0]  ;;  %142 = vst.msk [vmem:[#allocation2 + $0x34] sm:$0xf] %vm137_vm0, %v133_v15  ;;  %v2231_v30 = vld [vmem:[#allocation6 + $0x174] sm:$0xf]  ;;  %v1553_v33 = vor.u32 %v2187_v25, %v1550_v26 }
  0x4b   :  { %939 = vmatpush.bf16.msrb.mxu1 %v1885_v51  ;;  %v1726_v31 = vld [vmem:[#allocation6 + $0x178] sm:$0xf0]  ;;  %v2247_v32 = vld [vmem:[#allocation6 + $0x1f4] sm:$0xf]  ;;  %v2185_v35 = vld [vmem:[#allocation6 + $0x4] sm:$0xf]  ;;  %v1665_v46 = vor.u32 %v2215_v28, %v1662_v29 }
  0x4c   :  { %953 = vmatpush.bf16.msrb.mxu2 %v1949_v55  ;;  %v1790_v34 = vld [vmem:[#allocation6 + $0x1f8] sm:$0xf0]  ;;  %v1542_v36 = vld [vmem:[#allocation6 + $0x8] sm:$0xf0]  ;;  %v1528_v39 = vld [vmem:[#allocation2 + $0x10] sm:$0xf]  ;;  %v1729_v51 = vor.u32 %v2231_v30, %v1726_v31 }
  0x4d   :  { %v2180_v41 = vld [vmem:[#allocation2 + $0x14] sm:$0xf]  ;;  %v2213_v43 = vld [vmem:[#allocation6 + $0xe4] sm:$0xf]  ;;  %v1530_v48 = vld [vmem:[#allocation2 + $0x2c] sm:$0xf0]  ;;  %v1793_v52 = vor.u32 %v2247_v32, %v1790_v34  ;;  %v1545_v63 = vor.u32 %v2185_v35, %v1542_v36 }
  0x4e   :  { %967 = vmatpush.bf16.msrb.mxu3 %v1569_v0  ;;  %926 = vmatpush.bf16.msrb.mxu0 %v1813_v3  ;;  %v1654_v44 = vld [vmem:[#allocation6 + $0xe8] sm:$0xf0]  ;;  %v2183_v47 = vld [vmem:[#allocation2 + $0x28] sm:$0xf0]  ;;  %v2263_v54 = vld [vmem:[#allocation6 + $0x274] sm:$0xf]  ;;  %v2601_v58 = vor.u32 %v2180_v41, %v1530_v48 }
  0x4f   :  { %940 = vmatpush.bf16.msrb.mxu1 %v1877_v4  ;;  %v2229_v50 = vld [vmem:[#allocation6 + $0x164] sm:$0xf]  ;;  %v1718_v53 = vld [vmem:[#allocation6 + $0x168] sm:$0xf0]  ;;  %v1854_v55 = vld [vmem:[#allocation6 + $0x278] sm:$0xf0]  ;;  %v2599_v56 = vor.u32 %v2183_v47, %v1528_v39  ;;  %v1657_v1 = vor.u32 %v2213_v43, %v1654_v44 }
  0x50   :  { %954 = vmatpush.bf16.msrb.mxu2 %v1941_v8  ;;  %v1536_v57 = vld [vmem:[#allocation2 + $0x18] sm:$0xf]  ;;  %v2245_v60 = vld [vmem:[#allocation6 + $0x1e4] sm:$0xf]  ;;  %v1782_v61 = vld [vmem:[#allocation6 + $0x1e8] sm:$0xf0]  ;;  %v1857_v2 = vor.u32 %v2263_v54, %v1854_v55  ;;  %v1721_v5 = vor.u32 %v2229_v50, %v1718_v53 }
  0x51   :  { %v2184_v62 = vld [vmem:[#allocation2 + $0x30] sm:$0xf0]  ;;  %v2211_v3 = vld [vmem:[#allocation6 + $0xd4] sm:$0xf]  ;;  %v1646_v4 = vld [vmem:[#allocation6 + $0xd8] sm:$0xf0]  ;;  %v1785_v6 = vor.u32 %v2245_v60, %v1782_v61 }
  0x52   :  { %968 = vmatpush.bf16.msrb.mxu3 %v1561_v16  ;;  %927 = vmatpush.bf16.msrb.mxu0 %v1805_v21  ;;  %v2603_v0 = vor.u32 %v2184_v62, %v1536_v57  ;;  %v2227_v7 = vld [vmem:[#allocation6 + $0x154] sm:$0xf]  ;;  %v2261_v8 = vld [vmem:[#allocation6 + $0x264] sm:$0xf]  ;;  %v1846_v9 = vld [vmem:[#allocation6 + $0x268] sm:$0xf0]  ;;  %v1649_v13 = vor.u32 %v2211_v3, %v1646_v4 }
  0x53   :  { %941 = vmatpush.bf16.msrb.mxu1 %v1869_v22  ;;  %v1710_v10 = vld [vmem:[#allocation6 + $0x158] sm:$0xf0]  ;;  %v2243_v11 = vld [vmem:[#allocation6 + $0x1d4] sm:$0xf]  ;;  %v1849_v14 = vor.u32 %v2261_v8, %v1846_v9  ;;  %v2209_v15 = vld [vmem:[#allocation6 + $0xc4] sm:$0xf] }
  0x54   :  { %955 = vmatpush.bf16.msrb.mxu2 %v1933_v27  ;;  %v1774_v12 = vld [vmem:[#allocation6 + $0x1d8] sm:$0xf0]  ;;  %v1638_v16 = vld [vmem:[#allocation6 + $0xc8] sm:$0xf0]  ;;  %v1713_v17 = vor.u32 %v2227_v7, %v1710_v10  ;;  %v2225_v19 = vld [vmem:[#allocation6 + $0x144] sm:$0xf] }
  0x55   :  { %v1777_v18 = vor.u32 %v2243_v11, %v1774_v12  ;;  %v2259_v20 = vld [vmem:[#allocation6 + $0x254] sm:$0xf]  ;;  %v1838_v21 = vld [vmem:[#allocation6 + $0x258] sm:$0xf0]  ;;  %v1702_v22 = vld [vmem:[#allocation6 + $0x148] sm:$0xf0]  ;;  %v1641_v25 = vor.u32 %v2209_v15, %v1638_v16 }
  0x56   :  { %969 = vmatpush.bf16.msrb.mxu3 %v1553_v33  ;;  %928 = vmatpush.bf16.msrb.mxu0 %v1797_v37  ;;  %v2241_v23 = vld [vmem:[#allocation6 + $0x1c4] sm:$0xf]  ;;  %v1766_v24 = vld [vmem:[#allocation6 + $0x1c8] sm:$0xf0]  ;;  %v1841_v26 = vor.u32 %v2259_v20, %v1838_v21  ;;  %v2207_v27 = vld [vmem:[#allocation6 + $0xb4] sm:$0xf]  ;;  %v1705_v29 = vor.u32 %v2225_v19, %v1702_v22 }
  0x57   :  { %942 = vmatpush.bf16.msrb.mxu1 %v1861_v38  ;;  %v1630_v28 = vld [vmem:[#allocation6 + $0xb8] sm:$0xf0]  ;;  %v1769_v30 = vor.u32 %v2241_v23, %v1766_v24  ;;  %v2223_v31 = vld [vmem:[#allocation6 + $0x134] sm:$0xf]  ;;  %v2257_v32 = vld [vmem:[#allocation6 + $0x244] sm:$0xf] }
  0x58   :  { %956 = vmatpush.bf16.msrb.mxu2 %v1925_v45  ;;  %v1830_v33 = vld [vmem:[#allocation6 + $0x248] sm:$0xf0]  ;;  %v1694_v34 = vld [vmem:[#allocation6 + $0x138] sm:$0xf0]  ;;  %v2239_v35 = vld [vmem:[#allocation6 + $0x1b4] sm:$0xf]  ;;  %v1633_v37 = vor.u32 %v2207_v27, %v1630_v28 }
  0x59   :  { %929 = vmatmul.bf16.vlgmr.msrb.gmra.mxu0 %v2599_v56  ;;  %v1758_v36 = vld [vmem:[#allocation6 + $0x1b8] sm:$0xf0]  ;;  %v2205_v38 = vld [vmem:[#allocation6 + $0xa4] sm:$0xf]  ;;  %v1622_v39 = vld [vmem:[#allocation6 + $0xa8] sm:$0xf0]  ;;  %v1697_v41 = vor.u32 %v2223_v31, %v1694_v34 }
  0x5a   :  { %977 = vmatpush.bf16.msra.mxu0 %v1665_v46  ;;  %943 = vmatmul.bf16.vlgmr.msrb.gmra.mxu1 %v2601_v58  ;;  %v1761_v43 = vor.u32 %v2239_v35, %v1758_v36  ;;  %v2221_v44 = vld [vmem:[#allocation6 + $0x124] sm:$0xf]  ;;  %v2255_v45 = vld [vmem:[#allocation6 + $0x234] sm:$0xf]  ;;  %v1822_v46 = vld [vmem:[#allocation6 + $0x238] sm:$0xf0] }
  0x5b   :  { %991 = vmatpush.bf16.msra.mxu1 %v1729_v51  ;;  %957 = vmatmul.bf16.vlgmr.msrb.gmra.mxu2 %v2603_v0  ;;  %v1686_v47 = vld [vmem:[#allocation6 + $0x128] sm:$0xf0]  ;;  %v2237_v48 = vld [vmem:[#allocation6 + $0x1a4] sm:$0xf]  ;;  %v1625_v51 = vor.u32 %v2205_v38, %v1622_v39  ;;  %v2203_v53 = vld [vmem:[#allocation6 + $0x94] sm:$0xf] }
  0x5c   :  { %1005 = vmatpush.bf16.msra.mxu2 %v1793_v52  ;;  %970 = vmatpush.bf16.msrb.mxu3 %v1545_v63  ;;  %v1750_v50 = vld [vmem:[#allocation6 + $0x1a8] sm:$0xf0]  ;;  %v1825_v52 = vor.u32 %v2255_v45, %v1822_v46  ;;  %v1614_v54 = vld [vmem:[#allocation6 + $0x98] sm:$0xf0]  ;;  %v1689_v55 = vor.u32 %v2221_v44, %v1686_v47  ;;  %v2219_v60 = vld [vmem:[#allocation6 + $0x114] sm:$0xf] }
  0x5d   :  { %v1753_v57 = vor.u32 %v2237_v48, %v1750_v50  ;;  %v2253_v61 = vld [vmem:[#allocation6 + $0x224] sm:$0xf]  ;;  %v1814_v62 = vld [vmem:[#allocation6 + $0x228] sm:$0xf0]  ;;  %v1678_v63 = vld [vmem:[#allocation6 + $0x118] sm:$0xf0]  ;;  %v1617_v4 = vor.u32 %v2203_v53, %v1614_v54 }
  0x5e   :  { %978 = vmatpush.bf16.msra.mxu0 %v1657_v1  ;;  %v2235_v1 = vld [vmem:[#allocation6 + $0x194] sm:$0xf]  ;;  %v2201_v3 = vld [vmem:[#allocation6 + $0x84] sm:$0xf]  ;;  %v1670_v8 = vld [vmem:[#allocation6 + $0x108] sm:$0xf0]  ;;  %v1681_v9 = vor.u32 %v2219_v60, %v1678_v63 }
  0x5f   :  { %992 = vmatpush.bf16.msra.mxu1 %v1721_v5  ;;  %971 = vmatmul.bf16.vlgmr.msrb.gmra.mxu3 %v2585_v40  ;;  %v1833_v40 = vor.u32 %v2257_v32, %v1830_v33  ;;  %v1817_v5 = vor.u32 %v2253_v61, %v1814_v62  ;;  %v2217_v7 = vld [vmem:[#allocation6 + $0x104] sm:$0xf]  ;;  %v2251_v11 = vld [vmem:[#allocation6 + $0x214] sm:$0xf]  ;;  %v1806_v12 = vld [vmem:[#allocation6 + $0x218] sm:$0xf0] }
  0x60   :  { %1019 = vmatpush.bf16.msra.mxu3 %v1857_v2  ;;  %1006 = vmatpush.bf16.msra.mxu2 %v1785_v6  ;;  %v1742_v2 = vld [vmem:[#allocation6 + $0x198] sm:$0xf0]  ;;  %v1606_v6 = vld [vmem:[#allocation6 + $0x88] sm:$0xf0]  ;;  %v2295_v15 = vld [vmem:[#allocation6 + $0x374] sm:$0xf]  ;;  %v1809_v20 = vor.u32 %v2251_v11, %v1806_v12  ;;  %v1673_v21 = vor.u32 %v2217_v7, %v1670_v8 }
  0x61   :  { %v1745_v10 = vor.u32 %v2235_v1, %v1742_v2  ;;  %v1982_v16 = vld [vmem:[#allocation6 + $0x378] sm:$0xf0]  ;;  %v1609_v19 = vor.u32 %v2201_v3, %v1606_v6  ;;  %v2249_v23 = vld [vmem:[#allocation6 + $0x204] sm:$0xf]  ;;  %v1798_v24 = vld [vmem:[#allocation6 + $0x208] sm:$0xf0] }
  0x62   :  { %979 = vmatpush.bf16.msra.mxu0 %v1649_v13  ;;  %v2279_v13 = vld [vmem:[#allocation6 + $0x2f4] sm:$0xf]  ;;  %v2277_v27 = vld [vmem:[#allocation6 + $0x2e4] sm:$0xf]  ;;  %v1910_v28 = vld [vmem:[#allocation6 + $0x2e8] sm:$0xf0]  ;;  %v1801_v31 = vor.u32 %v2249_v23, %v1798_v24 }
  0x63   :  { %993 = vmatpush.bf16.msra.mxu1 %v1713_v17  ;;  %v2233_v17 = vld [vmem:[#allocation6 + $0x184] sm:$0xf]  ;;  %v1913_v32 = vor.u32 %v2277_v27, %v1910_v28  ;;  %v2275_v34 = vld [vmem:[#allocation6 + $0x2d4] sm:$0xf]  ;;  %v1902_v35 = vld [vmem:[#allocation6 + $0x2d8] sm:$0xf0] }
  0x64   :  { %1020 = vmatpush.bf16.msra.mxu3 %v1849_v14  ;;  %1007 = vmatpush.bf16.msra.mxu2 %v1777_v18  ;;  %v1918_v14 = vld [vmem:[#allocation6 + $0x2f8] sm:$0xf0]  ;;  %v1734_v18 = vld [vmem:[#allocation6 + $0x188] sm:$0xf0]  ;;  %v2291_v36 = vld [vmem:[#allocation6 + $0x354] sm:$0xf] }
  0x65   :  { %v1921_v22 = vor.u32 %v2279_v13, %v1918_v14  ;;  %v2273_v39 = vld [vmem:[#allocation6 + $0x2c4] sm:$0xf]  ;;  %v1958_v44 = vld [vmem:[#allocation6 + $0x348] sm:$0xf0]  ;;  %v2271_v46 = vld [vmem:[#allocation6 + $0x2b4] sm:$0xf] }
  0x66   :  { %980 = vmatpush.bf16.msra.mxu0 %v1641_v25  ;;  %v1985_v25 = vor.u32 %v2295_v15, %v1982_v16  ;;  %v1886_v47 = vld [vmem:[#allocation6 + $0x2b8] sm:$0xf0]  ;;  %v2287_v48 = vld [vmem:[#allocation6 + $0x334] sm:$0xf]  ;;  %v2285_v53 = vld [vmem:[#allocation6 + $0x324] sm:$0xf] }
  0x67   :  { %994 = vmatpush.bf16.msra.mxu1 %v1705_v29  ;;  %v2293_v29 = vld [vmem:[#allocation6 + $0x364] sm:$0xf]  ;;  %v1889_v50 = vor.u32 %v2271_v46, %v1886_v47  ;;  %v1942_v54 = vld [vmem:[#allocation6 + $0x328] sm:$0xf0]  ;;  %v1870_v60 = vld [vmem:[#allocation6 + $0x298] sm:$0xf0] }
  0x68   :  { %1021 = vmatpush.bf16.msra.mxu3 %v1841_v26  ;;  %1008 = vmatpush.bf16.msra.mxu2 %v1769_v30  ;;  %v1737_v26 = vor.u32 %v2233_v17, %v1734_v18  ;;  %v1974_v30 = vld [vmem:[#allocation6 + $0x368] sm:$0xf0]  ;;  %v2283_v61 = vld [vmem:[#allocation6 + $0x314] sm:$0xf]  ;;  %v1934_v62 = vld [vmem:[#allocation6 + $0x318] sm:$0xf0] }
  0x69   :  { %v1977_v33 = vor.u32 %v2293_v29, %v1974_v30  ;;  %v1937_v1 = vor.u32 %v2283_v61, %v1934_v62  ;;  %v2265_v2 = vld [vmem:[#allocation6 + $0x284] sm:$0xf]  ;;  %v1862_v3 = vld [vmem:[#allocation6 + $0x288] sm:$0xf0]  ;;  %v2044_v8 = vld [vmem:[#allocation9 + $0x70] sm:$0xf] }
  0x6a   :  { %981 = vmatpush.bf16.msra.mxu0 %v1633_v37  ;;  %v1966_v37 = vld [vmem:[#allocation6 + $0x358] sm:$0xf0]  ;;  %v1865_v6 = vor.u32 %v2265_v2, %v1862_v3  ;;  %v2036_v14 = vld [vmem:[#allocation9 + $0x60] sm:$0xf]  ;;  %v2310_v15 = vld [vmem:[#allocation9 + $0x64] sm:$0xf0] }
  0x6b   :  { %995 = vmatpush.bf16.msra.mxu1 %v1697_v41  ;;  %v1969_v38 = vor.u32 %v2291_v36, %v1966_v37  ;;  %v1894_v41 = vld [vmem:[#allocation6 + $0x2c8] sm:$0xf0]  ;;  %v2046_v12 = vld [vmem:[#allocation9 + $0x78] sm:$0xf0]  ;;  %v2309_v16 = vld [vmem:[#allocation9 + $0x64] sm:$0xf]  ;;  %v2037_v17 = vor.u32 %v2310_v15, %v2036_v14 }
  0x6c   :  { %1022 = vmatpush.bf16.msra.mxu3 %v1833_v40  ;;  %1009 = vmatpush.bf16.msra.mxu2 %v1761_v43  ;;  %v1905_v40 = vor.u32 %v2275_v34, %v1902_v35  ;;  %v2289_v43 = vld [vmem:[#allocation6 + $0x344] sm:$0xf]  ;;  %v1897_v45 = vor.u32 %v2273_v39, %v1894_v41  ;;  %v2038_v18 = vld [vmem:[#allocation9 + $0x68] sm:$0xf0]  ;;  %v2012_v30 = vld [vmem:[#allocation9 + $0x30] sm:$0xf] }
  0x6d   :  { %v2020_v24 = vld [vmem:[#allocation9 + $0x40] sm:$0xf]  ;;  %v2022_v28 = vld [vmem:[#allocation9 + $0x48] sm:$0xf0]  ;;  %v2014_v34 = vld [vmem:[#allocation9 + $0x38] sm:$0xf0] }
  0x6e   :  { %982 = vmatpush.bf16.msra.mxu0 %v1625_v51  ;;  %v2269_v51 = vld [vmem:[#allocation6 + $0x2a4] sm:$0xf]  ;;  %v2302_v37 = vld [vmem:[#allocation9 + $0x24] sm:$0xf0]  ;;  %v2006_v39 = vld [vmem:[#allocation9 + $0x28] sm:$0xf0] }
  0x6f   :  { %996 = vmatpush.bf16.msra.mxu1 %v1689_v55  ;;  %v1945_v55 = vor.u32 %v2285_v53, %v1942_v54  ;;  %v2004_v36 = vld [vmem:[#allocation9 + $0x20] sm:$0xf]  ;;  %v1998_v46 = vld [vmem:[#allocation9 + $0x18] sm:$0xf0]  ;;  %v1990_v54 = vld [vmem:[#allocation9 + $0x8] sm:$0xf0] }
  0x70   :  { %1023 = vmatpush.bf16.msra.mxu3 %v1825_v52  ;;  %1010 = vmatpush.bf16.msra.mxu2 %v1753_v57  ;;  %v1878_v52 = vld [vmem:[#allocation6 + $0x2a8] sm:$0xf0]  ;;  %v2267_v57 = vld [vmem:[#allocation6 + $0x294] sm:$0xf] }
  0x71   :  { %v1873_v63 = vor.u32 %v2267_v57, %v1870_v60  ;;  %v2108_v15 = vld [vmem:[#allocation9 + $0xf0] sm:$0xf] }
  0x72   :  { %983 = vmatpush.bf16.msra.mxu0 %v1617_v4  ;;  %v2281_v4 = vld [vmem:[#allocation6 + $0x304] sm:$0xf] }
  0x73   :  { %997 = vmatpush.bf16.msra.mxu1 %v1681_v9  ;;  %v2312_v9 = vld [vmem:[#allocation9 + $0x74] sm:$0xf0] }
  0x74   :  { %1024 = vmatpush.bf16.msra.mxu3 %v1817_v5  ;;  %1011 = vmatpush.bf16.msra.mxu2 %v1745_v10  ;;  %v1926_v5 = vld [vmem:[#allocation6 + $0x308] sm:$0xf0]  ;;  %v2311_v10 = vld [vmem:[#allocation9 + $0x74] sm:$0xf]  ;;  %v2045_v11 = vor.u32 %v2312_v9, %v2044_v8 }
  0x75   :  { %v1929_v7 = vor.u32 %v2281_v4, %v1926_v5  ;;  %v2049_v13 = vor.u32 %v2311_v10, %v2046_v12 }
  0x76   :  { %984 = vmatpush.bf16.msra.mxu0 %v1609_v19  ;;  %v2041_v19 = vor.u32 %v2309_v16, %v2038_v18  ;;  %v2328_v16 = vld [vmem:[#allocation9 + $0xf4] sm:$0xf0] }
  0x77   :  { %998 = vmatpush.bf16.msra.mxu1 %v1673_v21  ;;  %v2307_v21 = vld [vmem:[#allocation9 + $0x54] sm:$0xf]  ;;  %v2109_v18 = vor.u32 %v2328_v16, %v2108_v15 }
  0x78   :  { %1025 = vmatpush.bf16.msra.mxu3 %v1809_v20  ;;  %1012 = vmatpush.bf16.msra.mxu2 %v1737_v26  ;;  %v2028_v20 = vld [vmem:[#allocation9 + $0x50] sm:$0xf]  ;;  %v2305_v26 = vld [vmem:[#allocation9 + $0x44] sm:$0xf] }
  0x79   :  { %985 = vmatmul.bf16.vlgmr.msra.gmra.mxu0 %v2587_v42  ;;  %v1961_v42 = vor.u32 %v2289_v43, %v1958_v44  ;;  %v2025_v29 = vor.u32 %v2305_v26, %v2022_v28  ;;  %v1996_v43 = vld [vmem:[#allocation9 + $0x10] sm:$0xf]  ;;  %v2300_v44 = vld [vmem:[#allocation9 + $0x14] sm:$0xf0]  ;;  %v2325_v26 = vld [vmem:[#allocation9 + $0xe4] sm:$0xf] }
  0x7a   :  { %1033 = vmatpush.bf16.msrb.mxu0 %v1921_v22  ;;  %999 = vmatmul.bf16.vlgmr.msra.gmra.mxu1 %v2589_v49  ;;  %v1950_v49 = vld [vmem:[#allocation6 + $0x338] sm:$0xf0] }
  0x7b   :  { %1047 = vmatpush.bf16.msrb.mxu1 %v1985_v25  ;;  %1013 = vmatmul.bf16.vlgmr.msra.gmra.mxu2 %v2592_v59  ;;  %v1953_v59 = vor.u32 %v2287_v48, %v1950_v49  ;;  %v2030_v22 = vld [vmem:[#allocation9 + $0x58] sm:$0xf0]  ;;  %v2306_v25 = vld [vmem:[#allocation9 + $0x44] sm:$0xf0] }
  0x7c   :  { %1026 = vmatpush.bf16.msra.mxu3 %v1801_v31  ;;  %1265 = vmatpush.bf16.msrb.mxu2 %v2045_v11  ;;  %v2033_v23 = vor.u32 %v2307_v21, %v2030_v22  ;;  %v2021_v27 = vor.u32 %v2306_v25, %v2020_v24  ;;  %v2304_v31 = vld [vmem:[#allocation9 + $0x34] sm:$0xf0]  ;;  %v2615_v49 = vld [vmem:[#allocation8] sm:$0x3]  ;;  %v2100_v24 = vld [vmem:[#allocation9 + $0xe0] sm:$0xf] }
  0x7d   :  { %v2326_v25 = vld [vmem:[#allocation9 + $0xe4] sm:$0xf0] }
  0x7e   :  { %1034 = vmatpush.bf16.msrb.mxu0 %v1913_v32  ;;  %v2303_v32 = vld [vmem:[#allocation9 + $0x34] sm:$0xf]  ;;  %v2101_v28 = vor.u32 %v2326_v25, %v2100_v24 }
  0x7f   :  { %1048 = vmatpush.bf16.msrb.mxu1 %v1977_v33  ;;  %1027 = vmatmul.bf16.vlgmr.msra.gmra.mxu3 %v2599_v56  ;;  %v1881_v56 = vor.u32 %v2269_v51, %v1878_v52  ;;  %v2013_v33 = vor.u32 %v2304_v31, %v2012_v30  ;;  %v2017_v35 = vor.u32 %v2303_v32, %v2014_v34  ;;  %v2298_v51 = vld [vmem:[#allocation9 + $0x4] sm:$0xf0]  ;;  %v2297_v52 = vld [vmem:[#allocation9 + $0x4] sm:$0xf]  ;;  %v2092_v32 = vld [vmem:[#allocation9 + $0xd0] sm:$0xf] }
  0x80   :  { %1266 = vmatpush.bf16.msrb.mxu2 %v2037_v17  ;;  %v2327_v17 = vld [vmem:[#allocation9 + $0xf4] sm:$0xf]  ;;  %1279 = vmatpush.bf16.msrb.mxu3 %v2109_v18 }
  0x81   :  { %v2323_v34 = vld [vmem:[#allocation9 + $0xd4] sm:$0xf] }
  0x82   :  { %1035 = vmatpush.bf16.msrb.mxu0 %v1905_v40  ;;  %v2301_v40 = vld [vmem:[#allocation9 + $0x24] sm:$0xf] }
  0x83   :  { %1049 = vmatpush.bf16.msrb.mxu1 %v1969_v38  ;;  %v2005_v38 = vor.u32 %v2302_v37, %v2004_v36  ;;  %v2009_v41 = vor.u32 %v2301_v40, %v2006_v39  ;;  %v2094_v36 = vld [vmem:[#allocation9 + $0xd8] sm:$0xf0]  ;;  %v2322_v39 = vld [vmem:[#allocation9 + $0xc4] sm:$0xf0] }
  0x84   :  { %1280 = vmatpush.bf16.msrb.mxu3 %v2101_v28 }
  0x86   :  { %1036 = vmatpush.bf16.msrb.mxu0 %v1897_v45  ;;  %v2299_v45 = vld [vmem:[#allocation9 + $0x14] sm:$0xf] }
  0x87   :  { %1050 = vmatpush.bf16.msrb.mxu1 %v1961_v42  ;;  %v1997_v42 = vor.u32 %v2300_v44, %v1996_v43  ;;  %v2001_v48 = vor.u32 %v2299_v45, %v1998_v46  ;;  %v2321_v44 = vld [vmem:[#allocation9 + $0xc4] sm:$0xf]  ;;  %v2086_v45 = vld [vmem:[#allocation9 + $0xc8] sm:$0xf0] }
  0x88   :  { %v2089_v46 = vor.u32 %v2321_v44, %v2086_v45  ;;  %v2342_v44 = vld [vmem:[#allocation11 + $0x68] sm:$0xff] }
  0x89   :  { %v2334_v45 = vld [vmem:[#allocation11 + $0x28] sm:$0xff] }
  0x8a   :  { %1037 = vmatpush.bf16.msrb.mxu0 %v1889_v50 }
  0x8b   :  { %1051 = vmatpush.bf16.msrb.mxu1 %v1953_v59  ;;  %v1988_v59 = vld [vmem:[#allocation9] sm:$0xf] }
  0x8c   :  { %v1989_v53 = vor.u32 %v2298_v51, %v1988_v59  ;;  %v2078_v51 = vld [vmem:[#allocation9 + $0xb8] sm:$0xf0] }
  0x8e   :  { %1038 = vmatpush.bf16.msrb.mxu0 %v1881_v56  ;;  %v265_v56 = vperm.slane %v2615_v49, 0 }
  0x8f   :  { %1052 = vmatpush.bf16.msrb.mxu1 %v1945_v55  ;;  %v1993_v55 = vor.u32 %v2297_v52, %v1990_v54  ;;  %v2318_v54 = vld [vmem:[#allocation9 + $0xa4] sm:$0xf0] }
  0x92   :  { %1039 = vmatpush.bf16.msrb.mxu0 %v1873_v63 }
  0x93   :  { %1053 = vmatpush.bf16.msrb.mxu1 %v1937_v1 }
  0x96   :  { %1040 = vmatpush.bf16.msrb.mxu0 %v1865_v6 }
  0x97   :  { %1054 = vmatpush.bf16.msrb.mxu1 %v1929_v7 }
  0x99   :  { %1041 = vmatmul.bf16.vlgmr.msrb.gmra.mxu0 %v2601_v58  ;;  %v2308_v58 = vld [vmem:[#allocation9 + $0x54] sm:$0xf0] }
  0x9a   :  { %1055 = vmatmul.bf16.vlgmr.msrb.gmra.mxu1 %v2603_v0  ;;  %1293 = vmatpush.bf16.msra.mxu0 %v2049_v13  ;;  %v2029_v0 = vor.u32 %v2308_v58, %v2028_v20 }
  0x9c   :  { %1267 = vmatpush.bf16.msrb.mxu2 %v2029_v0 }
  0x9e   :  { %1294 = vmatpush.bf16.msra.mxu0 %v2041_v19  ;;  %v2110_v19 = vld [vmem:[#allocation9 + $0xf8] sm:$0xf0] }
  0x9f   :  { %v2113_v21 = vor.u32 %v2327_v17, %v2110_v19 }
  0xa0   :  { %1268 = vmatpush.bf16.msrb.mxu2 %v2021_v27 }
  0xa1   :  { %1307 = vmatpush.bf16.msra.mxu1 %v2113_v21 }
  0xa2   :  { %1295 = vmatpush.bf16.msra.mxu0 %v2033_v23 }
  0xa4   :  { %1269 = vmatpush.bf16.msrb.mxu2 %v2013_v33  ;;  %v2324_v33 = vld [vmem:[#allocation9 + $0xd4] sm:$0xf0] }
  0xa6   :  { %1296 = vmatpush.bf16.msra.mxu0 %v2025_v29  ;;  %v2102_v29 = vld [vmem:[#allocation9 + $0xe8] sm:$0xf0] }
  0xa7   :  { %v2105_v31 = vor.u32 %v2325_v26, %v2102_v29 }
  0xa8   :  { %1270 = vmatpush.bf16.msrb.mxu2 %v2005_v38  ;;  %v2084_v38 = vld [vmem:[#allocation9 + $0xc0] sm:$0xf] }
  0xa9   :  { %1308 = vmatpush.bf16.msra.mxu1 %v2105_v31 }
  0xaa   :  { %1297 = vmatpush.bf16.msra.mxu0 %v2017_v35  ;;  %v2093_v35 = vor.u32 %v2324_v33, %v2092_v32 }
  0xac   :  { %1271 = vmatpush.bf16.msrb.mxu2 %v1997_v42  ;;  %1281 = vmatpush.bf16.msrb.mxu3 %v2093_v35  ;;  %v2085_v42 = vor.u32 %v2322_v39, %v2084_v38  ;;  %v2344_v38 = vld [vmem:[#allocation11 + $0x78] sm:$0xff] }
  0xad   :  { %v2336_v39 = vld [vmem:[#allocation11 + $0x38] sm:$0xff] }
  0xae   :  { %1298 = vmatpush.bf16.msra.mxu0 %v2009_v41  ;;  %v2097_v41 = vor.u32 %v2323_v34, %v2094_v36 }
  0xb0   :  { %1272 = vmatpush.bf16.msrb.mxu2 %v1989_v53  ;;  %1309 = vmatpush.bf16.msra.mxu1 %v2097_v41  ;;  %v2068_v53 = vld [vmem:[#allocation9 + $0xa0] sm:$0xf]  ;;  %v2343_v41 = vld [vmem:[#allocation11 + $0x70] sm:$0xff] }
  0xb1   :  { %1282 = vmatpush.bf16.msrb.mxu3 %v2085_v42  ;;  %v2341_v42 = vld [vmem:[#allocation11 + $0x60] sm:$0xff] }
  0xb2   :  { %1299 = vmatpush.bf16.msra.mxu0 %v2001_v48  ;;  %v2320_v48 = vld [vmem:[#allocation9 + $0xb4] sm:$0xf0] }
  0xb4   :  { %1310 = vmatpush.bf16.msra.mxu1 %v2089_v46  ;;  %1459 = vmatpush.bf16.msra.mxu2 %v2336_v39  ;;  %v2340_v46 = vld [vmem:[#allocation11 + $0x58] sm:$0xff] }
  0xb6   :  { %1300 = vmatpush.bf16.msra.mxu0 %v1993_v55  ;;  %v2069_v55 = vor.u32 %v2318_v54, %v2068_v53  ;;  %v2330_v53 = vld [vmem:[#allocation11 + $0x8] sm:$0xff]  ;;  %v2329_v54 = vld [vmem:[#allocation11] sm:$0xff] }
  0xbe   :  { %v874_v47 = vpop.f32.mrf.mxu0 }
  0xbf   :  { %v875_v60 = vadd.f32 %v874_v47, %v265_v56  ;;  %v2076_v47 = vld [vmem:[#allocation9 + $0xb0] sm:$0xf] }
  0xc0   :  { %v2077_v59 = vor.u32 %v2320_v48, %v2076_v47  ;;  %v2333_v47 = vld [vmem:[#allocation11 + $0x20] sm:$0xff]  ;;  %v2339_v48 = vld [vmem:[#allocation11 + $0x50] sm:$0xff] }
  0xc1   :  { %v888_v50 = vpop.f32.mrf.mxu1 }
  0xc2   :  { %v889_v63 = vadd.f32 %v888_v50, %v875_v60  ;;  %v2319_v50 = vld [vmem:[#allocation9 + $0xb4] sm:$0xf]  ;;  %1283 = vmatpush.bf16.msrb.mxu3 %v2077_v59  ;;  %v2338_v59 = vld [vmem:[#allocation11 + $0x48] sm:$0xff] }
  0xc3   :  { %v2081_v52 = vor.u32 %v2319_v50, %v2078_v51  ;;  %v2332_v50 = vld [vmem:[#allocation11 + $0x18] sm:$0xff]  ;;  %v2331_v51 = vld [vmem:[#allocation11 + $0x10] sm:$0xff] }
  0xc5   :  { %1311 = vmatpush.bf16.msra.mxu1 %v2081_v52  ;;  %v2337_v52 = vld [vmem:[#allocation11 + $0x40] sm:$0xff] }
  0xc6   :  { %v902_v57 = vpop.f32.mrf.mxu2  ;;  %v876_v61 = vpop.f32.mrf.mxu0  ;;  %1284 = vmatpush.bf16.msrb.mxu3 %v2069_v55  ;;  %v1099_v55 = vld [vmem:[%s2635_s4] sm:$0x3] }
  0xc7   :  { %v877_v2 = vadd.f32 %v876_v61, %v265_v56  ;;  %v903_v4 = vadd.f32 %v902_v57, %v889_v63  ;;  %v2317_v56 = vld [vmem:[#allocation9 + $0xa4] sm:$0xf]  ;;  %v2070_v57 = vld [vmem:[#allocation9 + $0xa8] sm:$0xf0]  ;;  %v2316_v63 = vld [vmem:[#allocation9 + $0x94] sm:$0xf0] }
  0xc8   :  { %v916_v1 = vpop.f32.mrf.mxu3  ;;  %v2073_v61 = vor.u32 %v2317_v56, %v2070_v57 }
  0xc9   :  { %v890_v62 = vpop.f32.mrf.mxu1  ;;  %v917_v8 = vadd.f32 %v916_v1, %v903_v4  ;;  %v2315_v1 = vld [vmem:[#allocation9 + $0x94] sm:$0xf] }
  0xca   :  { %v891_v5 = vadd.f32 %v890_v62, %v877_v2  ;;  %v2060_v62 = vld [vmem:[#allocation9 + $0x90] sm:$0xf]  ;;  %1312 = vmatpush.bf16.msra.mxu1 %v2073_v61  ;;  %v1102_v61 = vperm.slane %v1099_v55, 1 }
  0xcb   :  { %v2061_v2 = vor.u32 %v2316_v63, %v2060_v62 }
  0xcd   :  { %1285 = vmatpush.bf16.msrb.mxu3 %v2061_v2  ;;  %v1101_v2 = vperm.slane %v1099_v55, 0 }
  0xce   :  { %v904_v3 = vpop.f32.mrf.mxu2 }
  0xcf   :  { %v905_v9 = vadd.f32 %v904_v3, %v891_v5  ;;  %v2062_v3 = vld [vmem:[#allocation9 + $0x98] sm:$0xf0]  ;;  %v2052_v5 = vld [vmem:[#allocation9 + $0x80] sm:$0xf] }
  0xd0   :  { %v918_v10 = vpop.f32.mrf.mxu3  ;;  %v2065_v4 = vor.u32 %v2315_v1, %v2062_v3 }
  0xd1   :  { %v919_v13 = vadd.f32 %v918_v10, %v905_v9  ;;  %v2054_v9 = vld [vmem:[#allocation9 + $0x88] sm:$0xf0] }
  0xd2   :  { %1313 = vmatpush.bf16.msra.mxu1 %v2065_v4 }
  0xd6   :  { %v930_v6 = vpop.f32.mrf.mxu0 }
  0xd7   :  { %v944_v7 = vpop.f32.mrf.mxu1  ;;  %v931_v11 = vadd.f32 %v930_v6, %v917_v8  ;;  %v2314_v6 = vld [vmem:[#allocation9 + $0x84] sm:$0xf0] }
  0xd8   :  { %v2053_v8 = vor.u32 %v2314_v6, %v2052_v5 }
  0xd9   :  { %v945_v20 = vadd.f32 %v944_v7, %v931_v11  ;;  %v2313_v7 = vld [vmem:[#allocation9 + $0x84] sm:$0xf] }
  0xda   :  { %v2057_v11 = vor.u32 %v2313_v7, %v2054_v9  ;;  %1286 = vmatpush.bf16.msrb.mxu3 %v2053_v8 }
  0xdc   :  { %1314 = vmatpush.bf16.msra.mxu1 %v2057_v11 }
  0xde   :  { %v958_v12 = vpop.f32.mrf.mxu2  ;;  %v932_v14 = vpop.f32.mrf.mxu0  ;;  %1473 = vmatpush.bf16.msra.mxu3 %v2344_v38 }
  0xdf   :  { %v933_v58 = vadd.f32 %v932_v14, %v919_v13  ;;  %v946_v0 = vpop.f32.mrf.mxu1  ;;  %v959_v22 = vadd.f32 %v958_v12, %v945_v20  ;;  %v266_v12 = vperm.slane %v2615_v49, 1 }
  0xe1   :  { %v947_v23 = vadd.f32 %v946_v0, %v933_v58  ;;  %v1061_v37 = vmax.f32 %v959_v22, 0.0 }
  0xe2   :  { %v972_v60 = vpop.f32.mrf.mxu3  ;;  %1474 = vmatpush.bf16.msra.mxu3 %v2343_v41 }
  0xe3   :  { %v973_v15 = vadd.f32 %v972_v60, %v266_v12 }
  0xe6   :  { %v960_v27 = vpop.f32.mrf.mxu2  ;;  %1475 = vmatpush.bf16.msra.mxu3 %v2342_v44 }
  0xe7   :  { %v961_v30 = vadd.f32 %v960_v27, %v947_v23 }
  0xe9   :  { %v1063_v40 = vmax.f32 %v961_v30, 0.0 }
  0xea   :  { %v974_v14 = vpop.f32.mrf.mxu3  ;;  %1476 = vmatpush.bf16.msra.mxu3 %v2341_v42 }
  0xeb   :  { %v1065_v43 = vpack.c.bf16 %v1063_v40, %v1061_v37  ;;  %v975_v17 = vadd.f32 %v974_v14, %v266_v12 }
  0xed   :  { %1273 = vmatmul.bf16.vlgmr.msrb.gmra.mxu2 %v1065_v43  ;;  %1301 = vmatmul.bf16.vlgmr.msra.gmra.mxu0 %v1065_v43  ;;  %v2335_v43 = vld [vmem:[#allocation11 + $0x30] sm:$0xff] }
  0xee   :  { %1460 = vmatpush.bf16.msra.mxu2 %v2335_v43  ;;  %1477 = vmatpush.bf16.msra.mxu3 %v2340_v46 }
  0xf2   :  { %1461 = vmatpush.bf16.msra.mxu2 %v2334_v45  ;;  %1478 = vmatpush.bf16.msra.mxu3 %v2339_v48 }
  0xf6   :  { %v986_v10 = vpop.f32.mrf.mxu0  ;;  %1462 = vmatpush.bf16.msra.mxu2 %v2333_v47  ;;  %1479 = vmatpush.bf16.msra.mxu3 %v2338_v59 }
  0xf7   :  { %v1000_v13 = vpop.f32.mrf.mxu1  ;;  %v987_v18 = vadd.f32 %v986_v10, %v973_v15 }
  0xf9   :  { %v1001_v21 = vadd.f32 %v1000_v13, %v987_v18 }
  0xfa   :  { %1463 = vmatpush.bf16.msra.mxu2 %v2332_v50  ;;  %1480 = vmatpush.bf16.msra.mxu3 %v2337_v52 }
  0xfe   :  { %v1014_v16 = vpop.f32.mrf.mxu2  ;;  %v988_v19 = vpop.f32.mrf.mxu0  ;;  %1464 = vmatpush.bf16.msra.mxu2 %v2331_v51 }
  0xff   :  { %v1002_v20 = vpop.f32.mrf.mxu1  ;;  %v989_v0 = vadd.f32 %v988_v19, %v975_v17  ;;  %v1015_v22 = vadd.f32 %v1014_v16, %v1001_v21  ;;  %v2358_v19 = vld [vmem:[%s2637_s6] ss:$0 sm:$0xff] }
 0x101   :  { %v1003_v23 = vadd.f32 %v1002_v20, %v989_v0 }
 0x102   :  { %v1028_v58 = vpop.f32.mrf.mxu3  ;;  %1465 = vmatpush.bf16.msra.mxu2 %v2330_v53 }
 0x103   :  { %v1029_v27 = vadd.f32 %v1028_v58, %v1015_v22 }
 0x106   :  { %v1016_v24 = vpop.f32.mrf.mxu2  ;;  %1466 = vmatpush.bf16.msra.mxu2 %v2329_v54 }
 0x107   :  { %v1017_v49 = vadd.f32 %v1016_v24, %v1003_v23 }
 0x10a   :  { %v1030_v28 = vpop.f32.mrf.mxu3 }
 0x10b   :  { %v1031_v30 = vadd.f32 %v1030_v28, %v1017_v49 }
 0x116   :  { %v1042_v25 = vpop.f32.mrf.mxu0 }
 0x117   :  { %v1056_v26 = vpop.f32.mrf.mxu1  ;;  %v1043_v29 = vadd.f32 %v1042_v25, %v1029_v27 }
 0x119   :  { %v1057_v32 = vadd.f32 %v1056_v26, %v1043_v29 }
 0x11b   :  { %v1062_v36 = vmax.f32 %v1057_v32, 0.0 }
 0x11e   :  { %v1044_v31 = vpop.f32.mrf.mxu0 }
 0x11f   :  { %v1045_v33 = vadd.f32 %v1044_v31, %v1031_v30  ;;  %v1058_v34 = vpop.f32.mrf.mxu1 }
 0x121   :  { %v1059_v35 = vadd.f32 %v1058_v34, %v1045_v33 }
 0x123   :  { %v1064_v37 = vmax.f32 %v1059_v35, 0.0 }
 0x125   :  { %v1066_v40 = vpack.c.bf16 %v1064_v37, %v1062_v36 }
 0x127   :  { %1287 = vmatmul.bf16.vlgmr.msrb.gmra.mxu3 %v1066_v40  ;;  %1315 = vmatmul.bf16.vlgmr.msra.gmra.mxu1 %v1066_v40 }
 0x16a   :  { %v1302_v56 = vpop.f32.mrf.mxu0 }
 0x16b   :  { %v1303_v63 = vadd.f32 %v1302_v56, %v1102_v61 }
 0x170   :  { %v1274_v57 = vpop.f32.mrf.mxu2 }
 0x171   :  { %v1275_v8 = vadd.f32 %v1274_v57, %v1101_v2 }
 0x172   :  { %v1304_v62 = vpop.f32.mrf.mxu0 }
 0x173   :  { %v1305_v3 = vadd.f32 %v1304_v62, %v1102_v61 }
 0x178   :  { %v1276_v7 = vpop.f32.mrf.mxu2 }
 0x179   :  { %v1277_v11 = vadd.f32 %v1276_v7, %v1101_v2 }
 0x1a4   :  { %v1316_v60 = vpop.f32.mrf.mxu1 }
 0x1a5   :  { %v1317_v4 = vadd.f32 %v1316_v60, %v1303_v63 }
 0x1a7   :  { %v1322_v9 = vmax.f32 %v1317_v4, 0.0 }
 0x1aa   :  { %v1288_v1 = vpop.f32.mrf.mxu3 }
 0x1ab   :  { %v1289_v12 = vadd.f32 %v1288_v1, %v1275_v8 }
 0x1ac   :  { %v1318_v5 = vpop.f32.mrf.mxu1 }
 0x1ad   :  { %v1319_v6 = vadd.f32 %v1318_v5, %v1305_v3  ;;  %v1321_v16 = vmax.f32 %v1289_v12, 0.0 }
 0x1af   :  { %v1324_v10 = vmax.f32 %v1319_v6, 0.0 }
 0x1b1   :  { %v1326_v13 = vpack.c.bf16 %v1324_v10, %v1322_v9 }
 0x1b2   :  { %v1290_v14 = vpop.f32.mrf.mxu3 }
 0x1b3   :  { %v1291_v15 = vadd.f32 %v1290_v14, %v1277_v11  ;;  %1481 = vmatmul.bf16.vlgmr.msra.gmra.mxu3 %v1326_v13 }
 0x1b5   :  { %v1323_v17 = vmax.f32 %v1291_v15, 0.0 }
 0x1b7   :  { %v1325_v18 = vpack.c.bf16 %v1323_v17, %v1321_v16 }
 0x1b9   :  { %1467 = vmatmul.bf16.vlgmr.msra.gmra.mxu2 %v1325_v18 }
 0x236   :  { %v1482_v20 = vpop.f32.mrf.mxu3 }
 0x23c   :  { %v1468_v58 = vpop.f32.mrf.mxu2 }
 0x23d   :  { %v1469_v21 = vadd.f32 %v2358_v19, %v1468_v58 }
 0x23e   :  { %v1484_v24 = vpop.f32.mrf.mxu3 }
 0x23f   :  { %v1483_v0 = vadd.f32 %v1482_v20, %v1469_v21 }
 0x241   :  { %1487 = vst [vmem:[#allocation12] sm:$0xff] %v1483_v0 }
 0x244   :  { %v1470_v22 = vpop.f32.mrf.mxu2 }
 0x245   :  { %v1471_v23 = vadd.f32 %v2358_v19, %v1470_v22 }
 0x247   :  { %v1485_v25 = vadd.f32 %v1484_v24, %v1471_v23 }
 0x249   :  { %1488 = vst [vmem:[#allocation12 + $0x8] sm:$0xff] %v1485_v25 }
 0x24a   :  { %1501 = dma.vmem_to_hbm [thread:$0]  %s1494_s8, 256, %s1496_s13, [#allocation5], %s2512_s9, %s2512_s9, %s2513_s10  }
 0x24b   :  { %2509 = dma.done.wait [#allocation5], 256  }
 0x24c   :  { %2510 = vsyncadd [#allocation5], 4294967040 }
 0x24d   :  { %1506 = vsyncpa [#allocation4], 1 }
 0x24e   :  { %1507 = vsyncpa [#allocation7], 1 }
 0x24f   :  { %1508 = vsyncpa [#allocation10], 1 }
 0x250   :  { %1509 = vsyncpa [#allocation5], 1 }

</bundles_post_ra>
